<compile_context>
chip_gen: v7x
topology: tpu7x:2x2x1
jax: 0.10.0
libtpu: 0.0.40
codegen_flags: <defaults>
</compile_context>

<pallas_src>
import functools

import jax
import jax.numpy as jnp
from jax.experimental import pallas as pl
from jax.experimental.pallas import tpu as pltpu

EPS = 1e-5


def _moment_mlp_kernel(x_ref,
                       w1_ref, g1_ref, beta1_ref,
                       w2_ref, g2_ref, beta2_ref,
                       o_ref,
                       *, num_segments, rows_per_segment):
    """Fused Linear -> BN1d -> ReLU -> Linear -> BN1d over S concatenated segments.

    x_ref holds the (S*N, M) concatenation of the segments.  BatchNorm stats
    are computed independently per segment by reshaping to (S, N, F) and
    reducing over axis=1 (training mode: batch mean + biased variance).
    """
    s, n = num_segments, rows_per_segment
    x = x_ref[...]                                                    # (S*N, M), f32

    # ---- Linear 1: one MXU push for all segments.  Bias omitted — it is
    # exactly cancelled by BN #1's batch-mean subtraction. ----
    h = jnp.dot(x, w1_ref[...], preferred_element_type=jnp.float32)   # (S*N, H)
    hidden = h.shape[-1]

    # ---- BatchNorm1d #1, per segment.  The S*N -> (S, N) sublane split is
    # layout-free when N is a multiple of 8 (true here: N=8). ----
    h3 = h.reshape(s, n, hidden)
    mean1 = jnp.mean(h3, axis=1, keepdims=True)                        # (S, 1, H)
    hc = h3 - mean1                                                    # centered once, reused
    var1 = jnp.mean(hc * hc, axis=1, keepdims=True)
    scale1 = jax.lax.rsqrt(var1 + EPS) * g1_ref[...]                   # gamma folded on (S,1,H)
    h3 = hc * scale1 + beta1_ref[...]

    # ---- ReLU (VPU) ----
    h3 = jnp.maximum(h3, 0.0)

    # ---- Linear 2: one MXU push.  Bias omitted — cancelled by BN #2. ----
    o = jnp.dot(h3.reshape(s * n, hidden), w2_ref[...],
                preferred_element_type=jnp.float32)                    # (S*N, C)
    cont = o.shape[-1]

    # ---- BatchNorm1d #2, per segment ----
    o3 = o.reshape(s, n, cont)
    mean2 = jnp.mean(o3, axis=1, keepdims=True)
    oc = o3 - mean2
    var2 = jnp.mean(oc * oc, axis=1, keepdims=True)
    scale2 = jax.lax.rsqrt(var2 + EPS) * g2_ref[...]                   # gamma folded on (S,1,C)
    o3 = oc * scale2 + beta2_ref[...]

    o_ref[...] = o3.reshape(s * n, cont).astype(o_ref.dtype)


def _fused_segments(stacked, params):
    """Run the MLP on S stacked segments (S, N, M) with one grid-less pallas_call."""
    s, n, m = stacked.shape
    h = params["w1"].shape[1]
    c = params["w2"].shape[1]
    x2d = stacked.reshape(s * n, m)          # concatenate segments along the batch axis

    vmem_spec = pl.BlockSpec(memory_space=pltpu.MemorySpace.VMEM)

    flops = 2 * s * n * (m * h + h * c) + 10 * s * n * (h + c)
    transcendentals = s * (h + c)            # one rsqrt per BN feature per segment
    bytes_accessed = 4 * (x2d.size + s * n * c
                          + params["w1"].size + params["w2"].size
                          + params["g1"].size + params["beta1"].size
                          + params["g2"].size + params["beta2"].size)

    # Whole problem is VMEM-resident; request scoped VMEM with generous
    # headroom, clamped to the smallest physical VMEM across generations
    # (v7x: 64 MiB; v5e/v6e scoped defaults are only 16/32 MiB).
    vmem_needed = 4 * (x2d.size + 2 * s * n * h + 2 * s * n * c
                       + params["w1"].size + params["w2"].size) + (1 << 20)
    vmem_limit = int(min(max(4 * vmem_needed, 32 << 20), 64 << 20))

    kernel = functools.partial(_moment_mlp_kernel,
                               num_segments=s, rows_per_segment=n)

    out = pl.pallas_call(
        kernel,
        in_specs=[vmem_spec] * 7,
        out_specs=vmem_spec,
        out_shape=jax.ShapeDtypeStruct((s * n, c), jnp.float32),
        compiler_params=pltpu.CompilerParams(vmem_limit_bytes=vmem_limit),
        cost_estimate=pl.CostEstimate(flops=flops,
                                      transcendentals=transcendentals,
                                      bytes_accessed=bytes_accessed),
    )(x2d, params["w1"], params["g1"], params["beta1"],
      params["w2"], params["g2"], params["beta2"])
    return out.reshape(s, n, c)


def moment_learn_forward(x, y, z, params):
    """Equivalent of MomentLearn.forward(x, y, z): both segments in one launch."""
    stacked = jnp.stack([x, y], axis=0)              # (2, N, M)
    out = _fused_segments(stacked, params)           # (2, N, C)
    return out[0], out[1], z


def moment_linear_segment(x, params):
    """Equivalent of forward_single_segment / forward_single_lab."""
    return _fused_segments(x[None], params)[0]


def init_params(key, number_of_moments, hidden_layer_dim, cont_dim):
    """Deterministic synthetic parameters (shapes match the torch module).

    b1/b2 are kept for parity with nn.Linear but are NOT fed to the kernel:
    a constant bias before a training-mode BatchNorm has zero effect on the
    output (exactly cancelled by the batch-mean subtraction).
    """
    k1, k2, k3, k4 = jax.random.split(key, 4)
    w1 = jax.random.normal(k1, (number_of_moments, hidden_layer_dim),
                           jnp.float32) * (1.0 / jnp.sqrt(number_of_moments))
    b1 = jax.random.normal(k2, (1, hidden_layer_dim), jnp.float32) * 0.1
    w2 = jax.random.normal(k3, (hidden_layer_dim, cont_dim),
                           jnp.float32) * (1.0 / jnp.sqrt(hidden_layer_dim))
    b2 = jax.random.normal(k4, (1, cont_dim), jnp.float32) * 0.1
    g1 = jnp.ones((1, hidden_layer_dim), jnp.float32)
    beta1 = jnp.zeros((1, hidden_layer_dim), jnp.float32)
    g2 = jnp.ones((1, cont_dim), jnp.float32)
    beta2 = jnp.zeros((1, cont_dim), jnp.float32)
    return dict(w1=w1, b1=b1, g1=g1, beta1=beta1,
                w2=w2, b2=b2, g2=g2, beta2=beta2)


def _reference_segment(inp, params):
    """Pure-JAX reference with the original (bias-including) formulation."""
    h = inp @ params["w1"] + params["b1"]
    m = h.mean(0, keepdims=True)
    v = ((h - m) ** 2).mean(0, keepdims=True)
    h = (h - m) / jnp.sqrt(v + EPS) * params["g1"] + params["beta1"]
    h = jnp.maximum(h, 0.0)
    o = h @ params["w2"] + params["b2"]
    m = o.mean(0, keepdims=True)
    v = ((o - m) ** 2).mean(0, keepdims=True)
    return (o - m) / jnp.sqrt(v + EPS) * params["g2"] + params["beta2"]


if __name__ == "__main__":
    number_of_moments = 16
    hidden_layer_dim = 32
    cont_dim = 8
    batch = 8

    key = jax.random.PRNGKey(0)
    kx, ky, kz, kp = jax.random.split(key, 4)
    x = jax.random.normal(kx, (batch, number_of_moments), jnp.float32)
    y = jax.random.normal(ky, (batch, number_of_moments), jnp.float32)
    z = jax.random.normal(kz, (batch, cont_dim), jnp.float32)

    params = init_params(kp, number_of_moments, hidden_layer_dim, cont_dim)

    out_x, out_y, out_z = moment_learn_forward(x, y, z, params)
    jax.block_until_ready((out_x, out_y, out_z))

    assert out_x.shape == (batch, cont_dim)
    assert out_y.shape == (batch, cont_dim)
    assert out_z.shape == z.shape

    # Single-segment entry point (forward_single_segment / forward_single_lab).
    out_single = moment_linear_segment(x, params)
    jax.block_until_ready(out_single)
    assert out_single.shape == (batch, cont_dim)

    # Numerical sanity check: bias-free fused kernel == bias-including reference
    # (the bias is exactly cancelled by training-mode BN).
    ref_x = _reference_segment(x, params)
    ref_y = _reference_segment(y, params)
    assert jnp.allclose(out_x, ref_x, atol=1e-3, rtol=1e-3)
    assert jnp.allclose(out_y, ref_y, atol=1e-3, rtol=1e-3)
    assert jnp.allclose(out_single, ref_x, atol=1e-3, rtol=1e-3)
    assert jnp.allclose(out_z, z)

    print("KERNEL_OK")
</pallas_src>

<mosaic_0001>
module attributes {stable_mosaic.version = 11 : i64} {
  func.func @_moment_mlp_kernel(%arg0: memref<16x16xf32, #tpu.memory_space<vmem>>, %arg1: memref<16x32xf32, #tpu.memory_space<vmem>>, %arg2: memref<1x32xf32, #tpu.memory_space<vmem>>, %arg3: memref<1x32xf32, #tpu.memory_space<vmem>>, %arg4: memref<32x8xf32, #tpu.memory_space<vmem>>, %arg5: memref<1x8xf32, #tpu.memory_space<vmem>>, %arg6: memref<1x8xf32, #tpu.memory_space<vmem>>, %arg7: memref<16x8xf32, #tpu.memory_space<vmem>>) attributes {dimension_semantics = [], scalar_prefetch = 0 : i64, scratch_operands = 0 : i64, tpu.core_type = #tpu.core_type<tc>} {
    %c0 = arith.constant 0 : index
    %c0_0 = arith.constant 0 : index
    %0 = vector.load %arg0[%c0, %c0_0] : memref<16x16xf32, #tpu.memory_space<vmem>>, vector<16x16xf32>
    %c0_1 = arith.constant 0 : index
    %c0_2 = arith.constant 0 : index
    %1 = vector.load %arg1[%c0_1, %c0_2] : memref<16x32xf32, #tpu.memory_space<vmem>>, vector<16x32xf32>
    %cst = arith.constant dense<0.000000e+00> : vector<16x32xf32>
    %2 = tpu.matmul %0, %1, %cst {dimension_numbers = #tpu.dot_dimension_numbers<[1], [0], [0], [1], [0, 0, 1, 1], [], []>} : vector<16x16xf32>, vector<16x32xf32>, vector<16x32xf32> -> vector<16x32xf32>
    %3 = vector.shape_cast %2 : vector<16x32xf32> to vector<2x8x32xf32>
    %cst_3 = arith.constant dense<0.000000e+00> : vector<2x32xf32>
    %4 = vector.multi_reduction <add>, %3, %cst_3 [1] : vector<2x8x32xf32> to vector<2x32xf32>
    %5 = vector.shape_cast %4 : vector<2x32xf32> to vector<2x1x32xf32>
    %cst_4 = arith.constant 8.000000e+00 : f32
    %6 = vector.broadcast %cst_4 : f32 to vector<2x1x32xf32>
    %7 = arith.divf %5, %6 : vector<2x1x32xf32>
    %8 = vector.broadcast %7 : vector<2x1x32xf32> to vector<2x8x32xf32>
    %9 = arith.subf %3, %8 : vector<2x8x32xf32>
    %10 = arith.mulf %9, %9 : vector<2x8x32xf32>
    %cst_5 = arith.constant dense<0.000000e+00> : vector<2x32xf32>
    %11 = vector.multi_reduction <add>, %10, %cst_5 [1] : vector<2x8x32xf32> to vector<2x32xf32>
    %12 = vector.shape_cast %11 : vector<2x32xf32> to vector<2x1x32xf32>
    %cst_6 = arith.constant 8.000000e+00 : f32
    %13 = vector.broadcast %cst_6 : f32 to vector<2x1x32xf32>
    %14 = arith.divf %12, %13 : vector<2x1x32xf32>
    %cst_7 = arith.constant 9.99999974E-6 : f32
    %15 = vector.broadcast %cst_7 : f32 to vector<2x1x32xf32>
    %16 = arith.addf %14, %15 : vector<2x1x32xf32>
    %17 = math.rsqrt %16 : vector<2x1x32xf32>
    %c0_8 = arith.constant 0 : index
    %c0_9 = arith.constant 0 : index
    %18 = vector.load %arg2[%c0_8, %c0_9] : memref<1x32xf32, #tpu.memory_space<vmem>>, vector<1x32xf32>
    %19 = vector.shape_cast %18 : vector<1x32xf32> to vector<1x1x32xf32>
    %20 = vector.broadcast %19 : vector<1x1x32xf32> to vector<2x1x32xf32>
    %21 = arith.mulf %17, %20 : vector<2x1x32xf32>
    %22 = vector.broadcast %21 : vector<2x1x32xf32> to vector<2x8x32xf32>
    %23 = arith.mulf %9, %22 : vector<2x8x32xf32>
    %c0_10 = arith.constant 0 : index
    %c0_11 = arith.constant 0 : index
    %24 = vector.load %arg3[%c0_10, %c0_11] : memref<1x32xf32, #tpu.memory_space<vmem>>, vector<1x32xf32>
    %25 = vector.shape_cast %24 : vector<1x32xf32> to vector<1x1x32xf32>
    %26 = vector.broadcast %25 : vector<1x1x32xf32> to vector<2x8x32xf32>
    %27 = arith.addf %23, %26 : vector<2x8x32xf32>
    %cst_12 = arith.constant 0.000000e+00 : f32
    %28 = vector.broadcast %cst_12 : f32 to vector<2x8x32xf32>
    %29 = arith.maximumf %27, %28 : vector<2x8x32xf32>
    %30 = vector.shape_cast %29 : vector<2x8x32xf32> to vector<16x32xf32>
    %c0_13 = arith.constant 0 : index
    %c0_14 = arith.constant 0 : index
    %31 = vector.load %arg4[%c0_13, %c0_14] : memref<32x8xf32, #tpu.memory_space<vmem>>, vector<32x8xf32>
    %cst_15 = arith.constant dense<0.000000e+00> : vector<16x8xf32>
    %32 = tpu.matmul %30, %31, %cst_15 {dimension_numbers = #tpu.dot_dimension_numbers<[1], [0], [0], [1], [0, 0, 1, 1], [], []>} : vector<16x32xf32>, vector<32x8xf32>, vector<16x8xf32> -> vector<16x8xf32>
    %33 = vector.shape_cast %32 : vector<16x8xf32> to vector<2x8x8xf32>
    %cst_16 = arith.constant dense<0.000000e+00> : vector<2x8xf32>
    %34 = vector.multi_reduction <add>, %33, %cst_16 [1] : vector<2x8x8xf32> to vector<2x8xf32>
    %35 = vector.shape_cast %34 : vector<2x8xf32> to vector<2x1x8xf32>
    %cst_17 = arith.constant 8.000000e+00 : f32
    %36 = vector.broadcast %cst_17 : f32 to vector<2x1x8xf32>
    %37 = arith.divf %35, %36 : vector<2x1x8xf32>
    %38 = vector.broadcast %37 : vector<2x1x8xf32> to vector<2x8x8xf32>
    %39 = arith.subf %33, %38 : vector<2x8x8xf32>
    %40 = arith.mulf %39, %39 : vector<2x8x8xf32>
    %cst_18 = arith.constant dense<0.000000e+00> : vector<2x8xf32>
    %41 = vector.multi_reduction <add>, %40, %cst_18 [1] : vector<2x8x8xf32> to vector<2x8xf32>
    %42 = vector.shape_cast %41 : vector<2x8xf32> to vector<2x1x8xf32>
    %cst_19 = arith.constant 8.000000e+00 : f32
    %43 = vector.broadcast %cst_19 : f32 to vector<2x1x8xf32>
    %44 = arith.divf %42, %43 : vector<2x1x8xf32>
    %cst_20 = arith.constant 9.99999974E-6 : f32
    %45 = vector.broadcast %cst_20 : f32 to vector<2x1x8xf32>
    %46 = arith.addf %44, %45 : vector<2x1x8xf32>
    %47 = math.rsqrt %46 : vector<2x1x8xf32>
    %c0_21 = arith.constant 0 : index
    %c0_22 = arith.constant 0 : index
    %48 = vector.load %arg5[%c0_21, %c0_22] : memref<1x8xf32, #tpu.memory_space<vmem>>, vector<1x8xf32>
    %49 = vector.shape_cast %48 : vector<1x8xf32> to vector<1x1x8xf32>
    %50 = vector.broadcast %49 : vector<1x1x8xf32> to vector<2x1x8xf32>
    %51 = arith.mulf %47, %50 : vector<2x1x8xf32>
    %52 = vector.broadcast %51 : vector<2x1x8xf32> to vector<2x8x8xf32>
    %53 = arith.mulf %39, %52 : vector<2x8x8xf32>
    %c0_23 = arith.constant 0 : index
    %c0_24 = arith.constant 0 : index
    %54 = vector.load %arg6[%c0_23, %c0_24] : memref<1x8xf32, #tpu.memory_space<vmem>>, vector<1x8xf32>
    %55 = vector.shape_cast %54 : vector<1x8xf32> to vector<1x1x8xf32>
    %56 = vector.broadcast %55 : vector<1x1x8xf32> to vector<2x8x8xf32>
    %57 = arith.addf %53, %56 : vector<2x8x8xf32>
    %58 = vector.shape_cast %57 : vector<2x8x8xf32> to vector<16x8xf32>
    %c0_25 = arith.constant 0 : index
    %c0_26 = arith.constant 0 : index
    %59 = vector.load %arg7[%c0_25, %c0_26] : memref<16x8xf32, #tpu.memory_space<vmem>>, vector<16x8xf32>
    tpu.vector_store %arg7[%c0_25, %c0_26], %58 {strides = array<i32>} : memref<16x8xf32, #tpu.memory_space<vmem>>, vector<16x8xf32>,
    return
  }
}

</mosaic_0001>

<bundles_post_ra>
// kernel: tpu_custom_call.1
= control target key start
LH: loop header
LB: loop body
LE: loop exit
PB: predicated region body
PF: predicated region fallthrough
CT: control target
= control target key end

     0   :  { %vm30_vm0 = vcmask 130048   ;;  %vm112_vm1 = vcmask 261120   ;;  %v157_v51 = vlaneseq  ;;  %vm263_vm2 = vcmask 64512   ;;  %s486_s1 = inlined_call_operand.vmem [shape: f32[16,32], index: 1, kind: input, shape index: {}]   ;;  %s487_s0 = inlined_call_operand.vmem [shape: f32[16,16], index: 0, kind: input, shape index: {}]   ;;  %s488_s4 = inlined_call_operand.vmem [shape: f32[32,8], index: 4, kind: input, shape index: {}]   ;;  %s489_s2 = inlined_call_operand.vmem [shape: f32[1,32], index: 2, kind: input, shape index: {}]   ;;  %s490_s3 = inlined_call_operand.vmem [shape: f32[1,32], index: 3, kind: input, shape index: {}]   ;;  %s491_s5 = inlined_call_operand.vmem [shape: f32[1,8], index: 5, kind: input, shape index: {}]   ;;  %s492_s6 = inlined_call_operand.vmem [shape: f32[1,8], index: 6, kind: input, shape index: {}]   ;;  %s493_s7 = inlined_call_operand.vmem [shape: f32[16,8], index: 7, kind: output, shape index: {}]  }
   0x1   :  { %v28_v0 = vld [vmem:[%s486_s1] sm:$0xff]  ;;  %v29_v1 = vld [vmem:[%s486_s1 + $0x8] sm:$0xff]  ;;  %v180_v8 = vld [vmem:[%s488_s4 + $0x10] sm:$0xff] }
   0x2   :  { %v26_v2 = vld [vmem:[%s487_s0] sm:$0xff]  ;;  %v366_v3 = vpack.c.bf16 %v29_v1, %v28_v0  ;;  %v27_v4 = vld [vmem:[%s487_s0 + $0x8] sm:$0xff]  ;;  %v181_v9 = vld [vmem:[%s488_s4 + $0x18] sm:$0xff]  ;;  %v158_v52 = vshrl.u32 %v157_v51, 7 }
   0x3   :  { %352 = vmatprep.mubr.msk.f32.mxu0 %vm30_vm0, %v26_v2  ;;  %v178_v5 = vld [vmem:[%s488_s4] sm:$0xff]  ;;  %v179_v6 = vld [vmem:[%s488_s4 + $0x8] sm:$0xff]  ;;  %v374_v10 = vpack.c.bf16 %v181_v9, %v180_v8 }
   0x4   :  { %367 = vmatprep.subr.bf16.mxu0 %v366_v3  ;;  %v370_v7 = vpack.c.bf16 %v179_v6, %v178_v5  ;;  %v154_v53 = vld [vmem:[%s489_s2] sm:$0x1]  ;;  %v457_v54 = vsub.s32 0, %v158_v52 }
   0x5   :  { %369 = vmatpush3.bf16.msra.mxu0 %v366_v3  ;;  %v334_v61 = vld [vmem:[%s490_s3] ss:$0 sm:$0xff] }
   0x6   :  { %371 = vmatprep.subr.bf16.mxu1 %v370_v7  ;;  %v337_v51 = vld [vmem:[%s492_s6] ss:$0 sm:$0xff] }
   0x7   :  { %373 = vmatpush3.bf16.msra.mxu1 %v370_v7 }
   0x8   :  { %353 = vmatmul.mubr.msk.f32.vlgmr.msra.gmra.mrb[0].mxu0 %vm30_vm0, %v27_v4  ;;  %375 = vmatprep.subr.bf16.mxu1 %v374_v10 }
   0xb   :  { %377 = vmatpush3.bf16.msra.mxu1 %v374_v10 }
  0xdb   :  { %v354_v11 = vpop.f32.mrb[0].mxu0 }
  0xdc   :  { %v120_v12 = vsel %vm112_vm1, %v354_v11, 0.0  ;;  %v103_v13 = vpop.f32.mrb[1].mxu0 }
  0xdd   :  { %v121_v14 = vrot.slane %v120_v12, 4  ;;  %v113_v15 = vsel %vm112_vm1, %v103_v13, 0.0 }
  0xde   :  { %v114_v16 = vrot.slane %v113_v15, 4 }
  0xdf   :  { %v122_v17 = vadd.f32 %v121_v14, %v120_v12 }
  0xe0   :  { %v115_v18 = vadd.f32 %v114_v16, %v113_v15 }
  0xe1   :  { %v123_v19 = vrot.slane %v122_v17, 2 }
  0xe2   :  { %v116_v20 = vrot.slane %v115_v18, 2 }
  0xe3   :  { %v124_v21 = vadd.f32 %v123_v19, %v122_v17 }
  0xe4   :  { %v117_v22 = vadd.f32 %v116_v20, %v115_v18 }
  0xe5   :  { %v125_v23 = vrot.slane %v124_v21, 1 }
  0xe6   :  { %v118_v24 = vrot.slane %v117_v22, 1 }
  0xe7   :  { %v126_v25 = vadd.f32 %v125_v23, %v124_v21 }
  0xe8   :  { %v119_v26 = vadd.f32 %v118_v24, %v117_v22 }
  0xe9   :  { %v129_v27 = vmul.f32 0.125, %v126_v25 }
  0xea   :  { %v128_v28 = vmul.f32 0.125, %v119_v26 }
  0xeb   :  { %v131_v29 = vsub.f32 %v354_v11, %v129_v27 }
  0xec   :  { %v130_v30 = vsub.f32 %v103_v13, %v128_v28 }
  0xed   :  { %v133_v31 = vmul.f32 %v131_v29, %v131_v29 }
  0xee   :  { %v132_v32 = vmul.f32 %v130_v30, %v130_v30 }
  0xef   :  { %v141_v33 = vsel %vm112_vm1, %v133_v31, 0.0 }
  0xf0   :  { %v142_v34 = vrot.slane %v141_v33, 4  ;;  %v134_v35 = vsel %vm112_vm1, %v132_v32, 0.0 }
  0xf1   :  { %v135_v36 = vrot.slane %v134_v35, 4 }
  0xf2   :  { %v143_v37 = vadd.f32 %v142_v34, %v141_v33 }
  0xf3   :  { %v136_v38 = vadd.f32 %v135_v36, %v134_v35 }
  0xf4   :  { %v144_v39 = vrot.slane %v143_v37, 2 }
  0xf5   :  { %v137_v40 = vrot.slane %v136_v38, 2 }
  0xf6   :  { %v145_v41 = vadd.f32 %v144_v39, %v143_v37 }
  0xf7   :  { %v138_v42 = vadd.f32 %v137_v40, %v136_v38 }
  0xf8   :  { %v146_v43 = vrot.slane %v145_v41, 1 }
  0xf9   :  { %v139_v44 = vrot.slane %v138_v42, 1 }
  0xfa   :  { %v147_v45 = vadd.f32 %v146_v43, %v145_v41 }
  0xfb   :  { %v140_v46 = vadd.f32 %v139_v44, %v138_v42  ;;  %v304_v44 = vld [vmem:[%s491_s5] sm:$0x1] }
  0xfc   :  { %v149_v47 = vmul.f32 0.125, %v147_v45 }
  0xfd   :  { %v148_v48 = vmul.f32 0.125, %v140_v46 }
  0xfe   :  { %v151_v49 = vadd.f32 1e-05, %v149_v47 }
  0xff   :  { %v150_v50 = vadd.f32 1e-05, %v148_v48 }
 0x100   :  { %378 = vrsqrt.f32 %v151_v49 }
 0x101   :  { %380 = vrsqrt.f32 %v150_v50 }
 0x10a   :  { %v379_v55 = vpop.eup %378 }
 0x10b   :  { %v381_v56 = vpop.eup %380  ;;  %v156_v57 = vmul.f32 %v379_v55, %v154_v53 }
 0x10c   :  { %v155_v58 = vmul.f32 %v381_v56, %v154_v53 }
 0x10d   :  { %v164_v59 = vrot.slane %v156_v57, %v457_v54 }
 0x10e   :  { %v160_v60 = vrot.slane %v155_v58, %v457_v54 }
 0x10f   :  { %v166_v62 = vmul.f32 %v164_v59, %v131_v29 }
 0x110   :  { %v165_v63 = vmul.f32 %v160_v60, %v130_v30 }
 0x111   :  { %v175_v0 = vadd.f32 %v334_v61, %v166_v62 }
 0x112   :  { %v174_v1 = vadd.f32 %v334_v61, %v165_v63 }
 0x113   :  { %v177_v3 = vmax.f32 %v175_v0, 0.0 }
 0x114   :  { %v176_v2 = vmax.f32 %v174_v1, 0.0 }
 0x116   :  { %363 = vmatprep.mubr.msk.f32.mxu1 %vm112_vm1, %v176_v2 }
 0x117   :  { %364 = vmatmul.mubr.msk.f32.vlgmr.msra.gmra.mrb[0].mxu1 %vm112_vm1, %v177_v3 }
 0x1ea   :  { %v365_v4 = vpop.f32.mrb[0].mxu1 }
 0x1eb   :  { %v271_v5 = vsel %vm263_vm2, %v365_v4, 0.0  ;;  %v254_v6 = vpop.f32.mrb[1].mxu1 }
 0x1ec   :  { %v272_v7 = vrot.slane %v271_v5, 4  ;;  %v264_v8 = vsel %vm263_vm2, %v254_v6, 0.0 }
 0x1ed   :  { %v265_v9 = vrot.slane %v264_v8, 4 }
 0x1ee   :  { %v273_v10 = vadd.f32 %v272_v7, %v271_v5 }
 0x1ef   :  { %v266_v11 = vadd.f32 %v265_v9, %v264_v8 }
 0x1f0   :  { %v274_v12 = vrot.slane %v273_v10, 2 }
 0x1f1   :  { %v267_v13 = vrot.slane %v266_v11, 2 }
 0x1f2   :  { %v275_v14 = vadd.f32 %v274_v12, %v273_v10 }
 0x1f3   :  { %v268_v15 = vadd.f32 %v267_v13, %v266_v11 }
 0x1f4   :  { %v276_v16 = vrot.slane %v275_v14, 1 }
 0x1f5   :  { %v269_v17 = vrot.slane %v268_v15, 1 }
 0x1f6   :  { %v277_v18 = vadd.f32 %v276_v16, %v275_v14 }
 0x1f7   :  { %v270_v19 = vadd.f32 %v269_v17, %v268_v15 }
 0x1f8   :  { %v279_v20 = vmul.f32 0.125, %v277_v18 }
 0x1f9   :  { %v278_v21 = vmul.f32 0.125, %v270_v19 }
 0x1fa   :  { %v281_v22 = vsub.f32 %v365_v4, %v279_v20 }
 0x1fb   :  { %v280_v23 = vsub.f32 %v254_v6, %v278_v21 }
 0x1fc   :  { %v283_v24 = vmul.f32 %v281_v22, %v281_v22 }
 0x1fd   :  { %v282_v25 = vmul.f32 %v280_v23, %v280_v23 }
 0x1fe   :  { %v291_v26 = vsel %vm263_vm2, %v283_v24, 0.0 }
 0x1ff   :  { %v292_v27 = vrot.slane %v291_v26, 4  ;;  %v284_v28 = vsel %vm263_vm2, %v282_v25, 0.0 }
 0x200   :  { %v285_v29 = vrot.slane %v284_v28, 4 }
 0x201   :  { %v293_v30 = vadd.f32 %v292_v27, %v291_v26 }
 0x202   :  { %v286_v31 = vadd.f32 %v285_v29, %v284_v28 }
 0x203   :  { %v294_v32 = vrot.slane %v293_v30, 2 }
 0x204   :  { %v287_v33 = vrot.slane %v286_v31, 2 }
 0x205   :  { %v295_v34 = vadd.f32 %v294_v32, %v293_v30 }
 0x206   :  { %v288_v35 = vadd.f32 %v287_v33, %v286_v31 }
 0x207   :  { %v296_v36 = vrot.slane %v295_v34, 1 }
 0x208   :  { %v289_v37 = vrot.slane %v288_v35, 1 }
 0x209   :  { %v297_v38 = vadd.f32 %v296_v36, %v295_v34 }
 0x20a   :  { %v290_v39 = vadd.f32 %v289_v37, %v288_v35 }
 0x20b   :  { %v299_v40 = vmul.f32 0.125, %v297_v38 }
 0x20c   :  { %v298_v41 = vmul.f32 0.125, %v290_v39 }
 0x20d   :  { %v301_v42 = vadd.f32 1e-05, %v299_v40 }
 0x20e   :  { %v300_v43 = vadd.f32 1e-05, %v298_v41 }
 0x20f   :  { %382 = vrsqrt.f32 %v301_v42 }
 0x210   :  { %384 = vrsqrt.f32 %v300_v43 }
 0x219   :  { %v383_v45 = vpop.eup %382 }
 0x21a   :  { %v385_v46 = vpop.eup %384  ;;  %v306_v47 = vmul.f32 %v383_v45, %v304_v44 }
 0x21b   :  { %v305_v48 = vmul.f32 %v385_v46, %v304_v44 }
 0x21c   :  { %v314_v49 = vrot.slane %v306_v47, %v457_v54 }
 0x21d   :  { %v310_v50 = vrot.slane %v305_v48, %v457_v54 }
 0x21e   :  { %v316_v52 = vmul.f32 %v314_v49, %v281_v22 }
 0x21f   :  { %v315_v53 = vmul.f32 %v310_v50, %v280_v23 }
 0x220   :  { %v325_v55 = vadd.f32 %v337_v51, %v316_v52 }
 0x221   :  { %v324_v56 = vadd.f32 %v337_v51, %v315_v53 }
 0x222   :  { %327 = vst.msk [vmem:[%s493_s7 + $0x8] sm:$0xff] %vm263_vm2, %v325_v55 }
 0x223   :  { %326 = vst.msk [vmem:[%s493_s7] sm:$0xff] %vm263_vm2, %v324_v56 }

</bundles_post_ra>
